<compile_context>
chip_gen: v7x
topology: tpu7x:2x2x1
jax: 0.10.0
libtpu: 0.0.40
codegen_flags: <defaults>
</compile_context>

<pallas_src>
import functools

import jax
import jax.numpy as jnp
from jax.experimental import pallas as pl
from jax.experimental.pallas import tpu as pltpu


def _cdiv(a, b):
    return -(-a // b)


def _round_up(x, m):
    return _cdiv(x, m) * m


def _vmem_budget_and_limit():
    """(live-block budget, vmem_limit_bytes) tuned per TPU generation."""
    kind = ""
    try:
        kind = jax.devices()[0].device_kind.lower()
    except Exception:
        pass
    if "v7" in kind or "7x" in kind:
        # 64 MiB physical VMEM, 3.2 TB/s HBM: bigger blocks to hide per-step
        # overhead, but leave headroom for compiler scratch.
        return 22 * 1024 * 1024, 48 * 1024 * 1024
    if "v6" in kind:
        # 128 MiB physical VMEM, ~1.4 TB/s HBM.
        return 26 * 1024 * 1024, 64 * 1024 * 1024
    if "v5 lite" in kind or "v5e" in kind or "v5lite" in kind:
        # Slower HBM -> per-step overhead already small; stay modest.
        return 13 * 1024 * 1024, 32 * 1024 * 1024
    # Unknown chip: conservative defaults.
    return 13 * 1024 * 1024, 32 * 1024 * 1024


def _sublane_multiple(itemsize):
    # 8 for f32, 16 for bf16/f16, 32 for int8/fp8 (native sublane packing).
    return max(8, 32 // max(int(itemsize), 1))


# ----------------------------------------------------------------------------
# Single-pass kernel: one block = (1, TC, H*W); stats + apply fused.
# ----------------------------------------------------------------------------

_LANE_CHUNK = 4096  # bounds the f32 temporary for narrow-dtype reductions


def _frn_kernel(x_ref, p_ref, o_ref, *, inv_hw):
    x = x_ref[...]                      # (1, TC, HW), input dtype
    p = p_ref[...]                      # (TC, 3) f32: [eps + |eps_p|, weight, bias]
    eps = p[:, 0:1]
    w = p[:, 1:2]
    b = p[:, 2:3]
    hw = x.shape[-1]

    if x.dtype == jnp.float32 or hw <= _LANE_CHUNK:
        xf = x.astype(jnp.float32)
        ssq = jnp.sum(xf * xf, axis=-1, keepdims=True)          # (1, TC, 1)
    else:
        # Chunked f32 accumulation: never materialize a full-block f32 copy
        # of a narrow-dtype tile.
        ssq = jnp.zeros(x.shape[:-1] + (1,), jnp.float32)
        for lo in range(0, hw, _LANE_CHUNK):
            xs = x[..., lo:min(lo + _LANE_CHUNK, hw)].astype(jnp.float32)
            ssq = ssq + jnp.sum(xs * xs, axis=-1, keepdims=True)

    # Per-channel fused scale; rsqrt only touches the (1, TC, 1) stats (EUP).
    scale = w * jax.lax.rsqrt(ssq * inv_hw + eps)                # (1, TC, 1)

    if o_ref.dtype == jnp.float32:
        o_ref[...] = x.astype(jnp.float32) * scale + b
    else:
        # Keep the per-element pass in the narrow dtype (bf16 VPU lanes);
        # differs from an all-f32 apply only by final-rounding order.
        o_ref[...] = (x * scale.astype(x.dtype) + b.astype(x.dtype)).astype(o_ref.dtype)


def _single_pass_tiles(C, HW, N, itemsize, budget):
    """Channel tiling for the fused kernel, or None if full-HW blocks cannot fit."""
    sub = _sublane_multiple(itemsize)
    per_chan = 4 * HW * itemsize                 # in + out blocks, double-buffered
    min_tc = C if C <= sub else sub
    if min_tc * per_chan > budget:
        return None                              # huge H*W -> two-pass fallback
    max_cblocks = _cdiv(C, sub)                  # finest legal channel split
    tc_cap = max(sub, (budget // per_chan) // sub * sub)
    need = _cdiv(C, tc_cap)                      # blocks needed to respect budget
    want = _cdiv(8, N) if N < 8 else 1           # keep 2 cores + pipeline busy
    n_cblocks = min(max_cblocks, max(need, want))
    if n_cblocks <= 1:
        return C, 1
    tc = min(tc_cap, _round_up(_cdiv(C, n_cblocks), sub))
    n_cblocks = _cdiv(C, tc)
    if n_cblocks <= 1:
        return C, 1
    return tc, n_cblocks


# ----------------------------------------------------------------------------
# Two-pass fallback (very large H*W): spatially tiled stats + apply kernels.
# ----------------------------------------------------------------------------

def _frn_stats_kernel(x_ref, ssq_ref, *, hw, ts):
    s = pl.program_id(2)

    @pl.when(s == 0)
    def _():
        ssq_ref[...] = jnp.zeros_like(ssq_ref)

    xf = x_ref[...].astype(jnp.float32)          # (1, TC, TS)
    # Mask the spatial tail: edge-block reads past H*W are unspecified.
    pos = jax.lax.broadcasted_iota(jnp.int32, xf.shape, dimension=2) + s * ts
    xm = jnp.where(pos < hw, xf, 0.0)
    ssq_ref[...] += jnp.sum(xm * xm, axis=-1, keepdims=True)


def _frn_apply_kernel(x_ref, p_ref, o_ref):
    x = x_ref[...]                               # (1, TC, TS)
    p = p_ref[...]                               # (1, TC, 2) f32: [scale, bias]
    scale = p[..., 0:1]
    b = p[..., 1:2]
    if o_ref.dtype == jnp.float32:
        o_ref[...] = x.astype(jnp.float32) * scale + b
    else:
        o_ref[...] = (x * scale.astype(x.dtype) + b.astype(x.dtype)).astype(o_ref.dtype)


def _two_pass_tiles(C, HW, itemsize, budget, max_spatial_tile=None):
    sub = _sublane_multiple(itemsize)
    tc = C if C <= sub else sub
    ts = max(128, (budget // (4 * tc * itemsize)) // 128 * 128)
    if max_spatial_tile is not None:
        ts = min(ts, max(128, (max_spatial_tile // 128) * 128))
    if ts >= HW:
        ts = HW
    return tc, _cdiv(C, tc), ts, _cdiv(HW, ts)


# ----------------------------------------------------------------------------
# Wrapper
# ----------------------------------------------------------------------------

def filter_response_norm(x, eps_p, weight, bias, eps=1e-5, *,
                         force_two_pass=False, _max_spatial_tile=None):
    """FRN forward. x: (N, C, H, W); eps_p/weight/bias: (1, C, 1, 1)."""
    N, C, H, W = x.shape
    HW = H * W
    itemsize = jnp.dtype(x.dtype).itemsize
    budget, vmem_limit = _vmem_budget_and_limit()

    x3 = x.reshape(N, C, HW)                      # no host-side pad, no slice epilogue
    eps_c = (eps + jnp.abs(eps_p)).reshape(C, 1).astype(jnp.float32)
    w_c = weight.reshape(C, 1).astype(jnp.float32)
    b_c = bias.reshape(C, 1).astype(jnp.float32)

    tiles = None if force_two_pass else _single_pass_tiles(C, HW, N, itemsize, budget)

    if tiles is not None:
        TC, n_cblocks = tiles
        params = jnp.concatenate([eps_c, w_c, b_c], axis=1)      # (C, 3), one DMA per block
        cost = pl.CostEstimate(
            flops=3 * N * C * HW,
            transcendentals=N * C,
            bytes_accessed=2 * N * C * HW * itemsize + 3 * C * 4)
        out3 = pl.pallas_call(
            functools.partial(_frn_kernel, inv_hw=1.0 / HW),
            out_shape=jax.ShapeDtypeStruct((N, C, HW), x.dtype),
            grid_spec=pltpu.PrefetchScalarGridSpec(
                num_scalar_prefetch=0,
                # Channels outermost: the param block index is constant over
                # the inner N axis, so its re-fetch is skipped.
                grid=(n_cblocks, N),
                in_specs=[
                    pl.BlockSpec((1, TC, HW), lambda c, n: (n, c, 0)),
                    pl.BlockSpec((TC, 3), lambda c, n: (c, 0)),
                ],
                out_specs=pl.BlockSpec((1, TC, HW), lambda c, n: (n, c, 0)),
            ),
            compiler_params=pltpu.CompilerParams(
                dimension_semantics=("parallel", "parallel"),
                vmem_limit_bytes=vmem_limit),
            cost_estimate=cost,
        )(x3, params)
        return out3.reshape(N, C, H, W)

    # ---- two-pass fallback: H*W too large for a full-row block in VMEM ----
    TC, n_cblocks, TS, n_sblocks = _two_pass_tiles(C, HW, itemsize, budget,
                                                   _max_spatial_tile)

    ssq = pl.pallas_call(
        functools.partial(_frn_stats_kernel, hw=HW, ts=TS),
        out_shape=jax.ShapeDtypeStruct((N, C, 1), jnp.float32),
        grid_spec=pltpu.PrefetchScalarGridSpec(
            num_scalar_prefetch=0,
            grid=(N, n_cblocks, n_sblocks),
            in_specs=[pl.BlockSpec((1, TC, TS), lambda n, c, s: (n, c, s))],
            out_specs=pl.BlockSpec((1, TC, 1), lambda n, c, s: (n, c, 0)),
        ),
        compiler_params=pltpu.CompilerParams(
            dimension_semantics=("parallel", "parallel", "arbitrary"),
            vmem_limit_bytes=vmem_limit),
        cost_estimate=pl.CostEstimate(
            flops=2 * N * C * HW, transcendentals=0,
            bytes_accessed=N * C * HW * itemsize + N * C * 4),
    )(x3)

    # Tiny per-(n, c) work: fold scale/bias into one packed array.
    scale = w_c.reshape(1, C, 1) * jax.lax.rsqrt(ssq * (1.0 / HW) + eps_c.reshape(1, C, 1))
    p2 = jnp.concatenate(
        [scale, jnp.broadcast_to(b_c.reshape(1, C, 1), scale.shape)], axis=-1)  # (N, C, 2)

    out3 = pl.pallas_call(
        _frn_apply_kernel,
        out_shape=jax.ShapeDtypeStruct((N, C, HW), x.dtype),
        grid_spec=pltpu.PrefetchScalarGridSpec(
            num_scalar_prefetch=0,
            grid=(N, n_cblocks, n_sblocks),
            in_specs=[
                pl.BlockSpec((1, TC, TS), lambda n, c, s: (n, c, s)),
                pl.BlockSpec((1, TC, 2), lambda n, c, s: (n, c, 0)),
            ],
            out_specs=pl.BlockSpec((1, TC, TS), lambda n, c, s: (n, c, s)),
        ),
        compiler_params=pltpu.CompilerParams(
            dimension_semantics=("parallel", "parallel", "parallel"),
            vmem_limit_bytes=vmem_limit),
        cost_estimate=pl.CostEstimate(
            flops=2 * N * C * HW, transcendentals=0,
            bytes_accessed=2 * N * C * HW * itemsize + 2 * N * C * 4),
    )(x3, p2)
    return out3.reshape(N, C, H, W)


if __name__ == "__main__":
    key = jax.random.PRNGKey(0)

    def ref_frn(x, eps_p, w, b, eps=1e-5):
        nu2 = jnp.mean(x * x, axis=(2, 3), keepdims=True)
        return x / jnp.sqrt(nu2 + eps + jnp.abs(eps_p)) * w + b

    # Test 1: module-default init (eps_p=0, w=1, b=0), fused single-pass path.
    N, C, H, W = 2, 4, 16, 16
    x = jax.random.normal(key, (N, C, H, W), dtype=jnp.float32)
    eps_p = jnp.zeros((1, C, 1, 1), jnp.float32)
    weight = jnp.ones((1, C, 1, 1), jnp.float32)
    bias = jnp.zeros((1, C, 1, 1), jnp.float32)
    out = jax.block_until_ready(filter_response_norm(x, eps_p, weight, bias))
    assert jnp.allclose(out, ref_frn(x, eps_p, weight, bias), atol=1e-5, rtol=1e-5), \
        "single-pass mismatch (default shapes)"

    # Test 2: odd shapes (C not a multiple of 8, H*W not a multiple of 128) ->
    # partial channel edge-block + masked edge stores on the single-pass path.
    N2, C2, H2, W2 = 2, 10, 12, 12
    k1, k2, k3, k4 = jax.random.split(key, 4)
    x2 = jax.random.normal(k1, (N2, C2, H2, W2), dtype=jnp.float32)
    eps_p2 = 0.01 * jax.random.normal(k2, (1, C2, 1, 1), dtype=jnp.float32)
    w2 = 1.0 + 0.1 * jax.random.normal(k3, (1, C2, 1, 1), dtype=jnp.float32)
    b2 = 0.1 * jax.random.normal(k4, (1, C2, 1, 1), dtype=jnp.float32)
    ref2 = ref_frn(x2, eps_p2, w2, b2)
    out2 = jax.block_until_ready(filter_response_norm(x2, eps_p2, w2, b2))
    assert jnp.allclose(out2, ref2, atol=1e-5, rtol=1e-5), "single-pass mismatch (odd shapes)"

    # Test 3: exercise the guarded large-H*W fallback (two-pass, spatially
    # tiled with tail masking) by forcing it at small shapes.
    out3 = jax.block_until_ready(
        filter_response_norm(x2, eps_p2, w2, b2,
                             force_two_pass=True, _max_spatial_tile=128))
    assert jnp.allclose(out3, ref2, atol=1e-5, rtol=1e-5), "two-pass fallback mismatch"

    print("KERNEL_OK")
</pallas_src>

<mosaic_0001>
module attributes {stable_mosaic.version = 11 : i64} {
  func.func @_frn_kernel(%arg0: i32, %arg1: i32, %arg2: memref<1x4x256xf32, #tpu.memory_space<vmem>>, %arg3: memref<4x3xf32, #tpu.memory_space<vmem>>, %arg4: memref<1x4x256xf32, #tpu.memory_space<vmem>>) attributes {dimension_semantics = [#tpu.dimension_semantics<parallel>, #tpu.dimension_semantics<parallel>], iteration_bounds = array<i64: 1, 2>, scalar_prefetch = 0 : i64, scratch_operands = 0 : i64, tpu.core_type = #tpu.core_type<tc>, window_params = [{transform_indices = @transform_0, window_bounds = array<i64: 1, 4, 256>}, {transform_indices = @transform_1, window_bounds = array<i64: 4, 3>}, {transform_indices = @transform_2, window_bounds = array<i64: 1, 4, 256>}]} {
    %c0 = arith.constant 0 : index
    %c0_0 = arith.constant 0 : index
    %c0_1 = arith.constant 0 : index
    %0 = vector.load %arg2[%c0, %c0_0, %c0_1] : memref<1x4x256xf32, #tpu.memory_space<vmem>>, vector<1x4x256xf32>
    %c0_2 = arith.constant 0 : index
    %c0_3 = arith.constant 0 : index
    %1 = vector.load %arg3[%c0_2, %c0_3] : memref<4x3xf32, #tpu.memory_space<vmem>>, vector<4x3xf32>
    %2 = vector.extract_strided_slice %1 {offsets = [0, 0], sizes = [4, 1], strides = [1, 1]} : vector<4x3xf32> to vector<4x1xf32>
    %3 = vector.extract_strided_slice %1 {offsets = [0, 1], sizes = [4, 1], strides = [1, 1]} : vector<4x3xf32> to vector<4x1xf32>
    %4 = vector.extract_strided_slice %1 {offsets = [0, 2], sizes = [4, 1], strides = [1, 1]} : vector<4x3xf32> to vector<4x1xf32>
    %5 = arith.mulf %0, %0 : vector<1x4x256xf32>
    %cst = arith.constant dense<0.000000e+00> : vector<1x4xf32>
    %6 = vector.multi_reduction <add>, %5, %cst [2] : vector<1x4x256xf32> to vector<1x4xf32>
    %7 = vector.shape_cast %6 : vector<1x4xf32> to vector<1x4x1xf32>
    %cst_4 = arith.constant 3.906250e-03 : f32
    %8 = vector.broadcast %cst_4 : f32 to vector<1x4x1xf32>
    %9 = arith.mulf %7, %8 : vector<1x4x1xf32>
    %10 = vector.shape_cast %2 : vector<4x1xf32> to vector<1x4x1xf32>
    %11 = arith.addf %9, %10 : vector<1x4x1xf32>
    %12 = math.rsqrt %11 : vector<1x4x1xf32>
    %13 = vector.shape_cast %3 : vector<4x1xf32> to vector<1x4x1xf32>
    %14 = arith.mulf %13, %12 : vector<1x4x1xf32>
    %15 = vector.broadcast %14 : vector<1x4x1xf32> to vector<1x4x256xf32>
    %16 = arith.mulf %0, %15 : vector<1x4x256xf32>
    %17 = vector.shape_cast %4 : vector<4x1xf32> to vector<1x4x1xf32>
    %18 = vector.broadcast %17 : vector<1x4x1xf32> to vector<1x4x256xf32>
    %19 = arith.addf %16, %18 : vector<1x4x256xf32>
    %c0_5 = arith.constant 0 : index
    %c0_6 = arith.constant 0 : index
    %c0_7 = arith.constant 0 : index
    %20 = vector.load %arg4[%c0_5, %c0_6, %c0_7] : memref<1x4x256xf32, #tpu.memory_space<vmem>>, vector<1x4x256xf32>
    tpu.vector_store %arg4[%c0_5, %c0_6, %c0_7], %19 {strides = array<i32>} : memref<1x4x256xf32, #tpu.memory_space<vmem>>, vector<1x4x256xf32>,
    return
  }
  func.func @transform_0(%arg0: i32, %arg1: i32) -> (i32, i32, i32) {
    %c0_i32 = arith.constant 0 : i32
    %c0_i32_0 = arith.constant 0 : i32
    return %arg1, %arg0, %c0_i32 : i32, i32, i32
  }
  func.func @transform_1(%arg0: i32, %arg1: i32) -> (i32, i32) {
    %c0_i32 = arith.constant 0 : i32
    %c0_i32_0 = arith.constant 0 : i32
    return %arg0, %c0_i32 : i32, i32
  }
  func.func @transform_2(%arg0: i32, %arg1: i32) -> (i32, i32, i32) {
    %c0_i32 = arith.constant 0 : i32
    %c0_i32_0 = arith.constant 0 : i32
    return %arg1, %arg0, %c0_i32 : i32, i32, i32
  }
}

</mosaic_0001>

<bundles_post_ra>
// kernel: tpu_custom_call.1
= control target key start
LH: loop header
LB: loop body
LE: loop exit
PB: predicated region body
PF: predicated region fallthrough
CT: control target
= control target key end

     0   :  { %7 = vsyncpa [#allocation3], 0  ;;  %s847_s0 = inlined_call_operand.hbm [shape: f32[2,4,256], index: 0, kind: input, shape index: {}]   ;;  %s848_s1 = inlined_call_operand.hbm [shape: f32[4,3], index: 1, kind: input, shape index: {}]   ;;  %s849_s2 = inlined_call_operand.hbm [shape: f32[2,4,256], index: 2, kind: output, shape index: {}]  }
   0x1   :  { %9 = vsyncpa [#allocation3 + $0x1], 0 }
   0x2   :  { %10 = vsyncpa [#allocation6], 0 }
   0x3   :  { %11 = vsyncpa [#allocation4], 0 }
   0x4   :  { %13 = vsyncpa [#allocation4 + $0x1], 0  ;;  %s627_s9 = smov 0   ;;  %s629_s10 = smov 0  }
   0x5   :  { %s631_s11 = smov 0   ;;  %s633_s12 = smov 0  }
   0x6   :  { %s635_s13 = smov 0   ;;  %s637_s14 = smov 0  }
   0x7 LB: > { %s358_s15 = sadd.s32 4294967295, %s603_s14   ;;  %s359_s16 = sadd.s32 4294967294, %s603_s14   ;;  %s603_s14 = sphi %s637_s14, %s19_s14   ;;  %s599_s13 = sphi %s635_s13, %s874_s13   ;;  %s595_s12 = sphi %s633_s12, %s873_s12   ;;  %s591_s11 = sphi %s631_s11, %s872_s11   ;;  %s587_s10 = sphi %s629_s10, %s871_s10   ;;  %s583_s9 = sphi %s627_s9, %s870_s9  }
   0x8   : > { %p53_p0 = scmp.ne.s32.totalorder %s587_s10, %s583_s9  ;;  %p661_p1 = scmp.eq.s32.totalorder %s358_s15, 0 }
   0x9   : > { %p665_p2 = scmp.eq.s32.totalorder %s358_s15, 1  ;;  %p111_p3 = scmp.eq.s32.totalorder %s359_s16, 1 }
   0xa   : > { %s854_s17 = scalar_select %p661_p1, 1, 0 }
   0xb   : > { %s855_s18 = scalar_select %p665_p2, 1, 0 }
   0xc   : > { %p671_p4 = por %p661_p1, %p53_p0  ;;  %p360_p5 = scmp.ge.s32.totalorder %s603_s14, 1 }
   0xd   : > { %p676_p6 = por %p111_p3, %p53_p0  ;;  %p118_p7 = scmp.lt.s32.totalorder %s603_s14, 3 }
   0xe   : > { %s856_s19 = scalar_select %p671_p4, 1, 0 }
   0xf   : > { %s857_s20 = scalar_select %p676_p6, 1, 0 }
  0x10   : > { %p681_p8 = pnand %p360_p5, %p118_p7  ;;  %s605_s22 = smov [#allocation5]  }
  0x11   : > { %s133_s23 = sshll.u32 %s605_s22, 4  ;;  %s28_s25 = sadd.s32 1, %s599_s13  ;;  %s134_s23 = int_to_ptr.vmem [resolvable:$true] %s133_s23 }
  0x12   : > { %s858_s21 = scalar_select %p681_p8, 1, 0 }
  0x13   : > { %p385_p10 = pneg %p681_p8  ;;  %s40_s26 = sadd.s32 1, %s591_s11 }
  0x14   : > { %p696_p12 = scmp.ge.s32.totalorder %s28_s25, 2  ;;  %s459_s30 = scalar_lea.hbm %s848_s1, 64 }
  0x15   : > { %p690_p11 = pnand %p385_p10, %p661_p1  ;;  %p460_p13 = scmp.ne.s32.totalorder %s848_s1, %s459_s30 }
  0x16   : > { %s860_s27 = scalar_select %p696_p12, 1, 0 }
  0x17   : > { %p461_p0 = pneg %p690_p11  ;;  %p466_p7 = scmp.lt.u32.totalorder %s459_s30, %s848_s1 }
  0x19   : > { %p462_p3 = pnand %p461_p0, %p460_p13 }
  0x1b   : > { %p463_p5 = pneg %p462_p3 }
  0x1d   : > { %p468_p10 = pnand %p466_p7, %p463_p5 }
  0x1f   : > { %471 = shalt.err (!%p468_p10)
}
  0x20   : > { %s472_s7 = scalar_lea.vmem %s134_s23, 64  ;;  %p480_p4 = scmp.lt.s32.totalorder %s134_s23, %s134_s23 }
  0x21   : > { %p473_p9 = scmp.ne.s32.totalorder %s134_s23, %s472_s7  ;;  %p481_p8 = scmp.lt.s32.totalorder %s472_s7, %s472_s7 }
  0x23   : > { %p475_p6 = pnand %p473_p9, %p461_p0  ;;  %p482_p2 = por %p481_p8, %p480_p4 }
  0x25   : > { %p476_p1 = pneg %p475_p6 }
  0x27   : > { %p483_p12 = pnand %p482_p2, %p476_p1 }
  0x29   : > { %486 = shalt.err (!%p483_p12)
}
  0x2a   : > { %388 = dma.hbm_to_vmem [thread:$0]  (!%p690_p11), %s848_s1, 64, %s134_s23, [#allocation6]  }
  0x2b   : > { %p861_p4 = scmp.ne.s32.totalorder %s860_s27, 0  ;;  %p47_p1 = scmp.ne.s32.totalorder %s591_s11, %s587_s10 }
  0x2c   : > { %p48_p2 = scmp.eq.s32.totalorder %s603_s14, 0  ;;  %p398_p6 = scmp.lt.s32.totalorder %s603_s14, 2 }
  0x2d   : > { %s876_s25 = smov (%p861_p4, %s28_s25), 0  ;;  %p862_p12 = scmp.ne.s32.totalorder %s855_s18, 0 }
  0x2e   : > { %s35_s16 = ssub.s32 %s599_s13, %s876_s25  ;;  %p49_p9 = por %p48_p2, %p47_p1 }
  0x2f   : > { %p38_p8 = scmp.eq.s32.totalorder %s35_s16, 0  ;;  %p728_p13 = por %p862_p12, %p47_p1 }
  0x30   : > { %s144_s24 = sand.u32 1, %s591_s11   ;;  %s375_s27 = sshll.u32 %s599_s13, 7 }
  0x31   : > { %s736_s28 = scalar_select %p38_p8, %s591_s11, %s40_s26  }
  0x32   : > { %s363_s23 = sshll.u32 %s144_s24, 3  ;;  %s742_s3 = scalar_lea.hbm %s847_s0, %s375_s27 }
  0x33   : > { %s148_s18 = scalar_lea.vmem [#allocation2], %s363_s23  ;;  %p746_p11 = pnand %p398_p6, %p49_p9 }
  0x34   : > { %s158_s4 = sshll.u32 %s148_s18, 4  ;;  %s145_s26 = scalar_lea.sflag [#allocation3], %s144_s24  ;;  %s744_s4 = int_to_ptr.vmem [resolvable:$true] %s158_s4 }
  0x35   : > { %s487_s6 = scalar_lea.hbm %s742_s3, 128  ;;  %p489_p3 = pneg %p746_p11 }
  0x36   : > { %p488_p0 = scmp.ne.s32.totalorder %s742_s3, %s487_s6  ;;  %s492_s15 = scalar_lea.hbm %s847_s0, 256 }
  0x37   : > { %p493_p10 = scmp.lt.u32.totalorder %s742_s3, %s847_s0  ;;  %p494_p4 = scmp.lt.u32.totalorder %s492_s15, %s487_s6 }
  0x38   : > { %p490_p5 = pnand %p489_p3, %p488_p0  ;;  %p496_p2 = scmp.lt.u32.totalorder %s487_s6, %s742_s3 }
  0x39   : > { %p495_p1 = por %p494_p4, %p493_p10 }
  0x3a   : > { %p491_p7 = pneg %p490_p5 }
  0x3b   : > { %p497_p6 = por %p496_p2, %p495_p1 }
  0x3d   : > { %p498_p8 = pnand %p497_p6, %p491_p7 }
  0x3f   : > { %501 = shalt.err (!%p498_p8)
}
  0x40   : > { %s502_s24 = scalar_lea.vmem %s744_s4, 128  ;;  %s606_s27 = smov [#allocation2]  }
  0x41   : > { %p503_p9 = scmp.ne.s32.totalorder %s744_s4, %s502_s24  ;;  %s507_s29 = sshll.u32 %s606_s27, 4  ;;  %s508_s29 = int_to_ptr.vmem [resolvable:$false] %s507_s29 }
  0x42   : > { %s509_s30 = scalar_lea.vmem %s508_s29, 256  ;;  %p510_p5 = scmp.lt.s32.totalorder %s744_s4, %s508_s29 }
  0x43   : > { %p505_p12 = pnand %p503_p9, %p489_p3  ;;  %p511_p10 = scmp.lt.s32.totalorder %s509_s30, %s502_s24 }
  0x45   : > { %p506_p0 = pneg %p505_p12  ;;  %p512_p4 = por %p511_p10, %p510_p5 }
  0x47   : > { %p513_p1 = pnand %p512_p4, %p506_p0 }
  0x49   : > { %516 = shalt.err (!%p513_p1)
}
  0x4a   : > { %392 = dma.hbm_to_vmem [thread:$0]  (!%p746_p11), %s742_s3, 128, %s744_s4, %s145_s26  }
  0x4b   : > { %p865_p7 = scmp.ne.s32.totalorder %s858_s21, 0 }
  0x4c   : > { %s778_s18 = sand.u32 (!%p865_p7), 1, %s587_s10   ;;  %p866_p3 = scmp.ne.s32.totalorder (!%p865_p7), %s856_s19, 0 }
  0x4d   : > { %167 = sbr.rel (%p865_p7) target bundleno = 521 (0x209), region = 28  ;;  %s367_s6 = sshll.u32 (!%p865_p7), %s778_s18, 3 }
  0x4e   : > { %s170_s7 = scalar_lea.sflag (!%p865_p7), [#allocation3], %s778_s18  ;;  %s173_s8 = scalar_lea.vmem (!%p865_p7), [#allocation2], %s367_s6 }
  0x54   : > { %570 = dma.done.wait (%p866_p3), %s170_s7, 128  }
  0x55   : > { %572 = vsyncadd (%p866_p3), %s170_s7, 4294967168  ;;  %p867_p11 = scmp.ne.s32.totalorder %s854_s17, 0 }
  0x57   : > { %574 = dma.done.wait (%p867_p11), [#allocation6], 64  }
  0x58   : > { %576 = vsyncadd (%p867_p11), [#allocation6], 4294967232  ;;  %v198_v0 = vld [vmem:[%s173_s8] sm:$0xff]  ;;  %vm204_vm0 = vcmask 1043456   ;;  %v199_v6 = vld [vmem:[#allocation5] sm:$0xf]  ;;  %v225_v17 = vlaneseq }
  0x59   : > { %v200_v1 = vmul.f32 %v198_v0, %v198_v0  ;;  %v607_v10 = vmov 1   ;;  %v608_v11 = vmov 2   ;;  %s609_s17 = smov 1   ;;  %v610_v15 = vmov 839922192   ;;  %s376_s19 = sshll.u32 %s595_s12, 7 }
  0x5a   : > { %454 = vset.pattern.permute.xlu1 %v607_v10  ;;  %456 = vset.pattern.permute.xlu0 %v608_v11  ;;  %v223_v16 = vunpack.c.l.s4 %v610_v15  ;;  %v226_v19 = vshrl.u32 %v225_v17, 7  ;;  %s197_s21 = scalar_lea.vmem [#allocation7], %s367_s6  ;;  %s798_s26 = scalar_lea.hbm %s849_s2, %s376_s19 }
  0x5b   : > { %v202_v2 = vcombine.high %v200_v1, %v200_v1  ;;  %v205_v3 = vsel %vm204_vm0, %v200_v1, 0.0  ;;  %s262_s3 = sshll.u32 %s197_s21, 4  ;;  %s246_s15 = scalar_lea.sflag [#allocation4], %s778_s18  ;;  %s800_s3 = int_to_ptr.vmem [resolvable:$true] %s262_s3 }
  0x5c   : > { %v224_v18 = vunpack.c.0.s8 %v223_v16  ;;  %s517_s16 = scalar_lea.vmem %s800_s3, 128  ;;  %s611_s12 = smov [#allocation7]  }
  0x5d   : > { %v206_v4 = vsel %vm204_vm0, %v202_v2, 0.0  ;;  %p518_p2 = scmp.ne.s32.totalorder %s800_s3, %s517_s16  ;;  %s521_s23 = sshll.u32 %s611_s12, 4  ;;  %s522_s23 = int_to_ptr.vmem [resolvable:$false] %s521_s23 }
  0x5e   : > { %v207_v5 = vadd.f32 %v206_v4, %v205_v3  ;;  %v227_v20 = vsub.s32 %v224_v18, %v226_v19  ;;  %s523_s24 = scalar_lea.vmem %s522_s23, 256  ;;  %p524_p9 = scmp.lt.s32.totalorder %s800_s3, %s522_s23 }
  0x5f   : > { %p519_p6 = pnand %p518_p2, %p728_p13  ;;  %p525_p12 = scmp.lt.s32.totalorder %s523_s24, %s517_s16 }
  0x60   : > { %208 = vadd.xlane.f32.xlu0 %v207_v5 }
  0x61   : > { %p520_p8 = pneg %p519_p6  ;;  %p526_p0 = por %p525_p12, %p524_p9 }
  0x63   : > { %p527_p5 = pnand %p526_p0, %p520_p8 }
  0xed   : > { %v209_v7 = vpop.xlane.xlu0 %208 }
  0xee   : > { %v210_v8 = vmul.f32 0.00390625, %v209_v7 }
  0xf0   : > { %v211_v9 = vadd.f32 %v210_v8, %v199_v6 }
  0xf2   : > { %457 = vrsqrt.f32 %v211_v9 }
  0xfc   : > { %v458_v12 = vpop.eup %457 }
  0xfd   : > { %214 = vrot.lane.b32.xlu0 %v458_v12, %s609_s17 }
 0x16f   : > { %v215_v13 = vpop.permute.xlu0 %214 }
 0x170   : > { %v217_v14 = vmul.f32 %v215_v13, %v199_v6 }
 0x172   : > { %220 = vperm.xlu1 %454, %v217_v14  }
 0x176   : > { %455 = vset.pattern.permute.xlu1 %v608_v11 }
 0x177   : > { %233 = vperm.xlu1 %455, %v199_v6  }
 0x1f1   : > { %v221_v21 = vpop.permute.xlu1 %220 }
 0x1f2   : > { %v228_v22 = vrot.slane %v221_v21, %v227_v20 }
 0x1f4   : > { %v230_v24 = vmul.f32 %v228_v22, %v198_v0 }
 0x1f6   : > { %v234_v23 = vpop.permute.xlu1 %233 }
 0x1f7   : > { %v241_v25 = vrot.slane %v234_v23, %v227_v20 }
 0x1f9   : > { %v243_v26 = vadd.f32 %v241_v25, %v230_v24 }
 0x1fb   : > { %244 = vst [vmem:[%s197_s21] sm:$0xff] %v243_v26 }
 0x1fc   : > { %530 = shalt.err (!%p527_p5)
}
 0x1fd   : > { %s531_s27 = scalar_lea.hbm %s798_s26, 128  ;;  %s535_s18 = scalar_lea.hbm %s849_s2, 256 }
 0x1fe   : > { %p532_p10 = scmp.ne.s32.totalorder %s798_s26, %s531_s27  ;;  %p536_p7 = scmp.lt.u32.totalorder %s798_s26, %s849_s2 }
 0x1ff   : > { %p537_p3 = scmp.lt.u32.totalorder %s535_s18, %s531_s27  ;;  %p539_p2 = scmp.lt.u32.totalorder %s531_s27, %s798_s26 }
 0x200   : > { %p533_p4 = pnand %p532_p10, %p728_p13 }
 0x201   : > { %p538_p11 = por %p537_p3, %p536_p7 }
 0x202   : > { %p534_p1 = pneg %p533_p4 }
 0x203   : > { %p540_p6 = por %p539_p2, %p538_p11 }
 0x205   : > { %p541_p8 = pnand %p540_p6, %p534_p1 }
 0x207   : > { %544 = shalt.err (!%p541_p8)
}
 0x208   : > { %383 = dma.vmem_to_hbm [thread:$0]  (%p728_p13), %s800_s3, 128, %s798_s26, %s246_s15  }
 0x209 PF: > { %s274_s8 = sand.u32 1, %s583_s9   ;;  %p868_p9 = scmp.ne.s32.totalorder %s857_s20, 0 }
 0x20a   : > { %p869_p12 = scmp.ge.s32.totalorder %s603_s14, 2  ;;  %s275_s17 = scalar_lea.sflag [#allocation4], %s274_s8 }
 0x20c   : > { %p394_p0 = pnand %p869_p12, %p868_p9 }
 0x20e   : > { %578 = dma.done.wait (!%p394_p0), %s275_s17, 128  }
 0x20f   : > { %580 = vsyncadd (!%p394_p0), %s275_s17, 4294967168  ;;  %s19_s14 = sadd.s32 1, %s603_s14   ;;  %s870_s9 = smov %s587_s10 }
 0x210   : > { %p16_p5 = scmp.ge.s32.totalorder %s19_s14, 4   ;;  %s871_s10 = smov %s591_s11 }
 0x211   : > { %s872_s11 = smov %s736_s28  ;;  %s873_s12 = smov %s599_s13 }
 0x212   : > { %s874_s13 = smov %s876_s25  ;;  %18 = sbr.rel (!%p16_p5) target bundleno = 7 (0x7), region = 78 }
 0x219   :  { %280 = vsyncpa [#allocation3], 1 }
 0x21a   :  { %282 = vsyncpa [#allocation3 + $0x1], 1 }
 0x21b   :  { %283 = vsyncpa [#allocation6], 1 }
 0x21c   :  { %284 = vsyncpa [#allocation4], 1 }
 0x21d   :  { %286 = vsyncpa [#allocation4 + $0x1], 1 }

</bundles_post_ra>
